<compile_context>
chip_gen: v6e
topology: v6e:2x2x1
jax: 0.10.0
libtpu: 0.0.40
codegen_flags: <defaults>
</compile_context>

<pallas_src>
import math
import numpy as np
import jax
import jax.numpy as jnp
from jax import lax
from jax.experimental import pallas as pl
from jax.experimental.pallas import tpu as pltpu


def _round_up(x, m):
    return ((x + m - 1) // m) * m


# ------------------------------ Pallas kernel ------------------------------- #

def _make_conv_kernel(has_col_affine, has_out_bnrelu, has_res):
    """Tiled matmul with K-reduction accumulator and fused epilogues.

    Ref order: a, [col_scale, col_shift], w, [out_scale, out_shift], [res],
               out, acc (VMEM scratch).
    """
    def kernel(*refs):
        i = 0
        a_ref = refs[i]; i += 1
        if has_col_affine:
            cs_ref, cb_ref = refs[i], refs[i + 1]; i += 2
        w_ref = refs[i]; i += 1
        if has_out_bnrelu:
            os_ref, ob_ref = refs[i], refs[i + 1]; i += 2
        if has_res:
            res_ref = refs[i]; i += 1
        o_ref, acc_ref = refs[i], refs[i + 1]

        k = pl.program_id(2)

        @pl.when(k == 0)
        def _init():
            acc_ref[...] = jnp.zeros_like(acc_ref)

        a = a_ref[...]
        if has_col_affine:
            # Fused BN + ReLU on the LHS columns (VPU work, hidden behind MXU).
            a = jnp.maximum(a.astype(jnp.float32) * cs_ref[...] + cb_ref[...], 0.0)
            a = a.astype(jnp.bfloat16)
        acc_ref[...] += jnp.dot(a, w_ref[...], preferred_element_type=jnp.float32)

        @pl.when(k == pl.num_programs(2) - 1)
        def _finalize():
            out = acc_ref[...]
            if has_out_bnrelu:
                out = jnp.maximum(out * os_ref[...] + ob_ref[...], 0.0)
            if has_res:
                out = out + res_ref[...]
            o_ref[...] = out.astype(o_ref.dtype)

    return kernel


def fused_conv_matmul(a, w, *, col_scale=None, col_shift=None,
                      out_scale=None, out_shift=None, res=None,
                      tm=512, tn=256, tk=256, out_dtype=jnp.float32):
    """out = epilogue( relu(a * col_scale + col_shift) @ w ), tiled + pipelined."""
    M, K = a.shape
    Kw, N = w.shape
    assert K == Kw
    has_col = col_scale is not None
    has_bn = out_scale is not None
    has_res = res is not None

    # Lane-dense (128-multiple) N/K tiles, 16-multiple M tiles (safe for bf16
    # sublane packing); caps keep double-buffered VMEM under every
    # generation's default scoped limit.
    tm = min(tm, _round_up(M, 16))
    tn = min(tn, _round_up(N, 128))
    tk = min(tk, _round_up(K, 128))
    Mp, Kp, Np = _round_up(M, tm), _round_up(K, tk), _round_up(N, tn)

    a_p = jnp.pad(a.astype(jnp.bfloat16), ((0, Mp - M), (0, Kp - K)))
    w_p = jnp.pad(w.astype(jnp.bfloat16), ((0, Kp - K), (0, Np - N)))

    args = [a_p]
    in_specs = [pl.BlockSpec((tm, tk), lambda i, j, k: (i, k))]
    if has_col:
        cs_p = jnp.pad(col_scale.astype(jnp.float32), ((0, 0), (0, Kp - K)))
        cb_p = jnp.pad(col_shift.astype(jnp.float32), ((0, 0), (0, Kp - K)))
        args += [cs_p, cb_p]
        in_specs += [pl.BlockSpec((1, tk), lambda i, j, k: (0, k))] * 2
    args.append(w_p)
    in_specs.append(pl.BlockSpec((tk, tn), lambda i, j, k: (k, j)))
    if has_bn:
        os_p = jnp.pad(out_scale.astype(jnp.float32), ((0, 0), (0, Np - N)))
        ob_p = jnp.pad(out_shift.astype(jnp.float32), ((0, 0), (0, Np - N)))
        args += [os_p, ob_p]
        in_specs += [pl.BlockSpec((1, tn), lambda i, j, k: (0, j))] * 2
    if has_res:
        res_p = jnp.pad(res.astype(jnp.float32), ((0, Mp - M), (0, Np - N)))
        args.append(res_p)
        in_specs.append(pl.BlockSpec((tm, tn), lambda i, j, k: (i, j)))

    out = pl.pallas_call(
        _make_conv_kernel(has_col, has_bn, has_res),
        out_shape=jax.ShapeDtypeStruct((Mp, Np), out_dtype),
        grid_spec=pltpu.PrefetchScalarGridSpec(
            num_scalar_prefetch=0,
            grid=(Mp // tm, Np // tn, Kp // tk),
            in_specs=in_specs,
            out_specs=pl.BlockSpec((tm, tn), lambda i, j, k: (i, j)),
            scratch_shapes=[pltpu.VMEM((tm, tn), jnp.float32)]),
        compiler_params=pltpu.CompilerParams(
            dimension_semantics=("parallel", "parallel", "arbitrary")),
    )(*args)
    return out[:M, :N]


# -------------------------------- JAX glue ----------------------------------- #

def _fold_bn(gamma, beta, mean, var, eps=1e-5):
    scale = gamma / jnp.sqrt(var + eps)
    shift = beta - mean * scale
    return (scale.reshape(1, -1).astype(jnp.float32),
            shift.reshape(1, -1).astype(jnp.float32))


def _im2col_3x3(x_pad, stride, Ho, Wo):
    # x_pad: (N, H+2, W+2, C) -> (N*Ho*Wo, 9*C), tap-major (dy, dx, ci) columns.
    # TODO(synk): taps are still materialized in HBM; a further step is making
    #             the 9 taps a K grid axis reading shifted windows directly.
    C = x_pad.shape[-1]
    cols = []
    for dy in range(3):
        for dx in range(3):
            cols.append(x_pad[:, dy:dy + stride * (Ho - 1) + 1:stride,
                              dx:dx + stride * (Wo - 1) + 1:stride, :])
    return jnp.concatenate(cols, axis=-1).reshape(-1, 9 * C)


def basic_block_w_forward(x_nchw, params, stride):
    x = jnp.transpose(x_nchw, (0, 2, 3, 1)).astype(jnp.float32)    # NHWC
    N, H, W, Cin = x.shape
    Cout = params["conv1_w"].shape[0]
    equal_in_out = (Cin == Cout)

    s1, b1 = _fold_bn(*params["bn1"])      # (1, Cin)
    s2, b2 = _fold_bn(*params["bn2"])      # (1, Cout)

    Ho = (H + 2 - 3) // stride + 1
    Wo = (W + 2 - 3) // stride + 1
    M = N * Ho * Wo

    # ---- conv1 (3x3, stride, pad=1): BN1+ReLU fused on the LHS columns,
    #      BN2+ReLU fused in the epilogue.  Pad x with -shift/scale per channel
    #      so the halo maps to exactly 0 after the in-kernel affine + ReLU.
    pad_val = (-b1 / s1).reshape(1, 1, 1, Cin)
    x_pad = jnp.broadcast_to(pad_val, (N, H + 2, W + 2, Cin))
    x_pad = x_pad.at[:, 1:-1, 1:-1, :].set(x).astype(jnp.bfloat16)
    p1 = _im2col_3x3(x_pad, stride, Ho, Wo)                        # (M, 9*Cin) bf16
    w1 = jnp.transpose(params["conv1_w"], (2, 3, 1, 0)).reshape(9 * Cin, Cout)
    cs1 = jnp.tile(s1, (1, 9))
    cb1 = jnp.tile(b1, (1, 9))
    h = fused_conv_matmul(p1, w1, col_scale=cs1, col_shift=cb1,
                          out_scale=s2, out_shift=b2,
                          out_dtype=jnp.bfloat16).reshape(N, Ho, Wo, Cout)

    # TODO(synk): dropout (droprate > 0, training mode) not implemented;
    #             the module default droprate=0.0 makes it a no-op.

    # ---- conv2 (3x3, stride 1, pad=1) with the residual path fused in.
    h_pad = jnp.pad(h, ((0, 0), (1, 1), (1, 1), (0, 0)))
    p2 = _im2col_3x3(h_pad, 1, Ho, Wo)                             # (M, 9*Cout) bf16
    w2 = jnp.transpose(params["conv2_w"], (2, 3, 1, 0)).reshape(9 * Cout, Cout)

    if equal_in_out:
        # Identity shortcut fused as a residual add in the conv2 epilogue
        # (requires stride == 1, same implicit constraint as the PyTorch block).
        res = x.reshape(M, Cin)
        out2 = fused_conv_matmul(p2, w2, res=res)
    else:
        # 1x1/stride shortcut fused into conv2's K reduction: its columns are
        # the strided raw x, with BN1+ReLU applied in-kernel via col scale/shift;
        # conv2's own columns (h >= 0, zero-padded) pass through the ReLU unchanged.
        ys = x[:, ::stride, ::stride, :].reshape(M, Cin).astype(jnp.bfloat16)
        p2_full = jnp.concatenate([p2, ys], axis=-1)               # (M, 9*Cout+Cin)
        w_sc = jnp.transpose(params["conv_sc_w"].reshape(Cout, Cin), (1, 0))
        w_full = jnp.concatenate([w2, w_sc], axis=0)
        cs2 = jnp.concatenate([jnp.ones((1, 9 * Cout), jnp.float32), s1], axis=-1)
        cb2 = jnp.concatenate([jnp.zeros((1, 9 * Cout), jnp.float32), b1], axis=-1)
        out2 = fused_conv_matmul(p2_full, w_full, col_scale=cs2, col_shift=cb2)

    out = out2.reshape(N, Ho, Wo, Cout)
    return jnp.transpose(out, (0, 3, 1, 2))                        # back to NCHW


# -------------------------------- reference ---------------------------------- #

def reference_forward(x_nchw, params, stride):
    x = jnp.transpose(x_nchw, (0, 2, 3, 1)).astype(jnp.float32)
    Cin = x.shape[-1]
    Cout = params["conv1_w"].shape[0]
    equal_in_out = (Cin == Cout)
    s1, b1 = _fold_bn(*params["bn1"])
    s2, b2 = _fold_bn(*params["bn2"])

    def conv(z, w_oihw, st, pad):
        return lax.conv_general_dilated(
            z, jnp.transpose(w_oihw, (2, 3, 1, 0)),
            window_strides=(st, st), padding=[(pad, pad), (pad, pad)],
            dimension_numbers=("NHWC", "HWIO", "NHWC"),
            precision=lax.Precision.HIGHEST)

    y = jnp.maximum(x * s1.reshape(1, 1, 1, -1) + b1.reshape(1, 1, 1, -1), 0.0)
    h = conv(y, params["conv1_w"], stride, 1)
    h = jnp.maximum(h * s2.reshape(1, 1, 1, -1) + b2.reshape(1, 1, 1, -1), 0.0)
    o = conv(h, params["conv2_w"], 1, 1)
    res = x if equal_in_out else conv(y, params["conv_sc_w"], stride, 0)
    return jnp.transpose(o + res, (0, 3, 1, 2))


# ----------------------------------- main ------------------------------------ #

if __name__ == "__main__":
    key = jax.random.PRNGKey(0)

    def bn_params(k, C):
        k1, k2, k3, k4 = jax.random.split(k, 4)
        gamma = jax.random.uniform(k1, (C,), jnp.float32, 0.5, 1.5)
        beta = 0.1 * jax.random.normal(k2, (C,), jnp.float32)
        mean = 0.1 * jax.random.normal(k3, (C,), jnp.float32)
        var = jax.random.uniform(k4, (C,), jnp.float32, 0.5, 1.5)
        return (gamma, beta, mean, var)

    fwd = jax.jit(basic_block_w_forward, static_argnums=(2,))

    # Case 1: in_planes != out_planes, stride 2  (fused conv-shortcut path).
    N, Cin, H, W, Cout, stride = 2, 4, 16, 16, 8, 2
    ks = jax.random.split(key, 7)
    x = jax.random.normal(ks[0], (N, Cin, H, W), jnp.float32)
    params = {
        "bn1": bn_params(ks[1], Cin),
        "conv1_w": jax.random.normal(ks[2], (Cout, Cin, 3, 3), jnp.float32)
                   * math.sqrt(2.0 / (9 * Cin)),
        "bn2": bn_params(ks[3], Cout),
        "conv2_w": jax.random.normal(ks[4], (Cout, Cout, 3, 3), jnp.float32)
                   * math.sqrt(2.0 / (9 * Cout)),
        "conv_sc_w": jax.random.normal(ks[5], (Cout, Cin, 1, 1), jnp.float32)
                     * math.sqrt(2.0 / Cin),
    }
    out = jax.block_until_ready(fwd(x, params, stride))
    assert out.shape == (N, Cout, H // stride, W // stride), out.shape
    ref = reference_forward(x, params, stride)
    # bf16 MXU operands (f32 accumulation) -> loosened tolerance vs f32 reference.
    np.testing.assert_allclose(np.asarray(out), np.asarray(ref),
                               rtol=5e-2, atol=5e-2)

    # Case 2: in_planes == out_planes, stride 1  (identity residual-add path).
    N2, C2, H2, W2 = 2, 8, 16, 16
    ks2 = jax.random.split(ks[6], 5)
    x2 = jax.random.normal(ks2[0], (N2, C2, H2, W2), jnp.float32)
    params2 = {
        "bn1": bn_params(ks2[1], C2),
        "conv1_w": jax.random.normal(ks2[2], (C2, C2, 3, 3), jnp.float32)
                   * math.sqrt(2.0 / (9 * C2)),
        "bn2": bn_params(ks2[3], C2),
        "conv2_w": jax.random.normal(ks2[4], (C2, C2, 3, 3), jnp.float32)
                   * math.sqrt(2.0 / (9 * C2)),
    }
    out2 = jax.block_until_ready(fwd(x2, params2, 1))
    assert out2.shape == (N2, C2, H2, W2), out2.shape
    ref2 = reference_forward(x2, params2, 1)
    np.testing.assert_allclose(np.asarray(out2), np.asarray(ref2),
                               rtol=5e-2, atol=5e-2)

    print("KERNEL_OK")
</pallas_src>

<mosaic_0001>
module attributes {stable_mosaic.version = 11 : i64} {
  func.func @kernel(%arg0: i32, %arg1: i32, %arg2: i32, %arg3: memref<128x128xbf16, #tpu.memory_space<vmem>>, %arg4: memref<1x128xf32, #tpu.memory_space<vmem>>, %arg5: memref<1x128xf32, #tpu.memory_space<vmem>>, %arg6: memref<128x128xbf16, #tpu.memory_space<vmem>>, %arg7: memref<1x128xf32, #tpu.memory_space<vmem>>, %arg8: memref<1x128xf32, #tpu.memory_space<vmem>>, %arg9: memref<128x128xbf16, #tpu.memory_space<vmem>>, %arg10: memref<128x128xf32, #tpu.memory_space<vmem>>) attributes {dimension_semantics = [#tpu.dimension_semantics<parallel>, #tpu.dimension_semantics<parallel>, #tpu.dimension_semantics<arbitrary>], iteration_bounds = array<i64: 1, 1, 1>, scalar_prefetch = 0 : i64, scratch_operands = 1 : i64, tpu.core_type = #tpu.core_type<tc>, window_params = [{transform_indices = @transform_0, window_bounds = array<i64: 128, 128>}, {transform_indices = @transform_1, window_bounds = array<i64: 1, 128>}, {transform_indices = @transform_2, window_bounds = array<i64: 1, 128>}, {transform_indices = @transform_3, window_bounds = array<i64: 128, 128>}, {transform_indices = @transform_4, window_bounds = array<i64: 1, 128>}, {transform_indices = @transform_5, window_bounds = array<i64: 1, 128>}, {transform_indices = @transform_6, window_bounds = array<i64: 128, 128>}]} {
    %c0_i32 = arith.constant 0 : i32
    %0 = arith.cmpi eq, %arg2, %c0_i32 : i32
    %1 = arith.extui %0 : i1 to i32
    %c0_i32_0 = arith.constant 0 : i32
    %2 = arith.cmpi ne, %1, %c0_i32_0 : i32
    scf.if %2 {
      %cst_15 = arith.constant 0.000000e+00 : f32
      %22 = vector.broadcast %cst_15 : f32 to vector<128x128xf32>
      %c0_16 = arith.constant 0 : index
      %c0_17 = arith.constant 0 : index
      %23 = vector.load %arg10[%c0_16, %c0_17] : memref<128x128xf32, #tpu.memory_space<vmem>>, vector<128x128xf32>
      tpu.vector_store %arg10[%c0_16, %c0_17], %22 {strides = array<i32>} : memref<128x128xf32, #tpu.memory_space<vmem>>, vector<128x128xf32>,
    } else {
    }
    %c0 = arith.constant 0 : index
    %c0_1 = arith.constant 0 : index
    %3 = vector.load %arg3[%c0, %c0_1] : memref<128x128xbf16, #tpu.memory_space<vmem>>, vector<128x128xbf16>
    %4 = arith.extf %3 : vector<128x128xbf16> to vector<128x128xf32>
    %c0_2 = arith.constant 0 : index
    %c0_3 = arith.constant 0 : index
    %5 = vector.load %arg4[%c0_2, %c0_3] : memref<1x128xf32, #tpu.memory_space<vmem>>, vector<1x128xf32>
    %6 = vector.broadcast %5 : vector<1x128xf32> to vector<128x128xf32>
    %7 = arith.mulf %4, %6 : vector<128x128xf32>
    %c0_4 = arith.constant 0 : index
    %c0_5 = arith.constant 0 : index
    %8 = vector.load %arg5[%c0_4, %c0_5] : memref<1x128xf32, #tpu.memory_space<vmem>>, vector<1x128xf32>
    %9 = vector.broadcast %8 : vector<1x128xf32> to vector<128x128xf32>
    %10 = arith.addf %7, %9 : vector<128x128xf32>
    %cst = arith.constant 0.000000e+00 : f32
    %11 = vector.broadcast %cst : f32 to vector<128x128xf32>
    %12 = arith.maximumf %10, %11 : vector<128x128xf32>
    %13 = arith.truncf %12 : vector<128x128xf32> to vector<128x128xbf16>
    %c0_6 = arith.constant 0 : index
    %c0_7 = arith.constant 0 : index
    %14 = vector.load %arg10[%c0_6, %c0_7] : memref<128x128xf32, #tpu.memory_space<vmem>>, vector<128x128xf32>
    %c0_8 = arith.constant 0 : index
    %c0_9 = arith.constant 0 : index
    %15 = vector.load %arg6[%c0_8, %c0_9] : memref<128x128xbf16, #tpu.memory_space<vmem>>, vector<128x128xbf16>
    %cst_10 = arith.constant dense<0.000000e+00> : vector<128x128xf32>
    %16 = tpu.matmul %13, %15, %cst_10 {dimension_numbers = #tpu.dot_dimension_numbers<[1], [0], [0], [1], [0, 0, 1, 1], [], []>} : vector<128x128xbf16>, vector<128x128xbf16>, vector<128x128xf32> -> vector<128x128xf32>
    %17 = arith.addf %14, %16 : vector<128x128xf32>
    %c0_11 = arith.constant 0 : index
    %c0_12 = arith.constant 0 : index
    %18 = vector.load %arg10[%c0_11, %c0_12] : memref<128x128xf32, #tpu.memory_space<vmem>>, vector<128x128xf32>
    tpu.vector_store %arg10[%c0_11, %c0_12], %17 {strides = array<i32>} : memref<128x128xf32, #tpu.memory_space<vmem>>, vector<128x128xf32>,
    %c0_i32_13 = arith.constant 0 : i32
    %19 = arith.cmpi eq, %arg2, %c0_i32_13 : i32
    %20 = arith.extui %19 : i1 to i32
    %c0_i32_14 = arith.constant 0 : i32
    %21 = arith.cmpi ne, %20, %c0_i32_14 : i32
    scf.if %21 {
      %c0_15 = arith.constant 0 : index
      %c0_16 = arith.constant 0 : index
      %22 = vector.load %arg10[%c0_15, %c0_16] : memref<128x128xf32, #tpu.memory_space<vmem>>, vector<128x128xf32>
      %c0_17 = arith.constant 0 : index
      %c0_18 = arith.constant 0 : index
      %23 = vector.load %arg7[%c0_17, %c0_18] : memref<1x128xf32, #tpu.memory_space<vmem>>, vector<1x128xf32>
      %24 = vector.broadcast %23 : vector<1x128xf32> to vector<128x128xf32>
      %25 = arith.mulf %22, %24 : vector<128x128xf32>
      %c0_19 = arith.constant 0 : index
      %c0_20 = arith.constant 0 : index
      %26 = vector.load %arg8[%c0_19, %c0_20] : memref<1x128xf32, #tpu.memory_space<vmem>>, vector<1x128xf32>
      %27 = vector.broadcast %26 : vector<1x128xf32> to vector<128x128xf32>
      %28 = arith.addf %25, %27 : vector<128x128xf32>
      %cst_21 = arith.constant 0.000000e+00 : f32
      %29 = vector.broadcast %cst_21 : f32 to vector<128x128xf32>
      %30 = arith.maximumf %28, %29 : vector<128x128xf32>
      %31 = arith.truncf %30 : vector<128x128xf32> to vector<128x128xbf16>
      %c0_22 = arith.constant 0 : index
      %c0_23 = arith.constant 0 : index
      %32 = vector.load %arg9[%c0_22, %c0_23] : memref<128x128xbf16, #tpu.memory_space<vmem>>, vector<128x128xbf16>
      tpu.vector_store %arg9[%c0_22, %c0_23], %31 {strides = array<i32>} : memref<128x128xbf16, #tpu.memory_space<vmem>>, vector<128x128xbf16>,
    } else {
    }
    return
  }
  func.func @transform_0(%arg0: i32, %arg1: i32, %arg2: i32) -> (i32, i32) {
    %c0_i32 = arith.constant 0 : i32
    return %arg0, %arg2 : i32, i32
  }
  func.func @transform_1(%arg0: i32, %arg1: i32, %arg2: i32) -> (i32, i32) {
    %c0_i32 = arith.constant 0 : i32
    %c0_i32_0 = arith.constant 0 : i32
    return %c0_i32, %arg2 : i32, i32
  }
  func.func @transform_2(%arg0: i32, %arg1: i32, %arg2: i32) -> (i32, i32) {
    %c0_i32 = arith.constant 0 : i32
    %c0_i32_0 = arith.constant 0 : i32
    return %c0_i32, %arg2 : i32, i32
  }
  func.func @transform_3(%arg0: i32, %arg1: i32, %arg2: i32) -> (i32, i32) {
    %c0_i32 = arith.constant 0 : i32
    return %arg2, %arg1 : i32, i32
  }
  func.func @transform_4(%arg0: i32, %arg1: i32, %arg2: i32) -> (i32, i32) {
    %c0_i32 = arith.constant 0 : i32
    %c0_i32_0 = arith.constant 0 : i32
    return %c0_i32, %arg1 : i32, i32
  }
  func.func @transform_5(%arg0: i32, %arg1: i32, %arg2: i32) -> (i32, i32) {
    %c0_i32 = arith.constant 0 : i32
    %c0_i32_0 = arith.constant 0 : i32
    return %c0_i32, %arg1 : i32, i32
  }
  func.func @transform_6(%arg0: i32, %arg1: i32, %arg2: i32) -> (i32, i32) {
    %c0_i32 = arith.constant 0 : i32
    return %arg0, %arg1 : i32, i32
  }
}

module attributes {stable_mosaic.version = 11 : i64} {
  func.func @kernel(%arg0: i32, %arg1: i32, %arg2: i32, %arg3: memref<128x128xbf16, #tpu.memory_space<vmem>>, %arg4: memref<1x128xf32, #tpu.memory_space<vmem>>, %arg5: memref<1x128xf32, #tpu.memory_space<vmem>>, %arg6: memref<128x128xbf16, #tpu.memory_space<vmem>>, %arg7: memref<128x128xf32, #tpu.memory_space<vmem>>, %arg8: memref<128x128xf32, #tpu.memory_space<vmem>>) attributes {dimension_semantics = [#tpu.dimension_semantics<parallel>, #tpu.dimension_semantics<parallel>, #tpu.dimension_semantics<arbitrary>], iteration_bounds = array<i64: 1, 1, 1>, scalar_prefetch = 0 : i64, scratch_operands = 1 : i64, tpu.core_type = #tpu.core_type<tc>, window_params = [{transform_indices = @transform_0, window_bounds = array<i64: 128, 128>}, {transform_indices = @transform_1, window_bounds = array<i64: 1, 128>}, {transform_indices = @transform_2, window_bounds = array<i64: 1, 128>}, {transform_indices = @transform_3, window_bounds = array<i64: 128, 128>}, {transform_indices = @transform_4, window_bounds = array<i64: 128, 128>}]} {
    %c0_i32 = arith.constant 0 : i32
    %0 = arith.cmpi eq, %arg2, %c0_i32 : i32
    %1 = arith.extui %0 : i1 to i32
    %c0_i32_0 = arith.constant 0 : i32
    %2 = arith.cmpi ne, %1, %c0_i32_0 : i32
    scf.if %2 {
      %cst_15 = arith.constant 0.000000e+00 : f32
      %22 = vector.broadcast %cst_15 : f32 to vector<128x128xf32>
      %c0_16 = arith.constant 0 : index
      %c0_17 = arith.constant 0 : index
      %23 = vector.load %arg8[%c0_16, %c0_17] : memref<128x128xf32, #tpu.memory_space<vmem>>, vector<128x128xf32>
      tpu.vector_store %arg8[%c0_16, %c0_17], %22 {strides = array<i32>} : memref<128x128xf32, #tpu.memory_space<vmem>>, vector<128x128xf32>,
    } else {
    }
    %c0 = arith.constant 0 : index
    %c0_1 = arith.constant 0 : index
    %3 = vector.load %arg3[%c0, %c0_1] : memref<128x128xbf16, #tpu.memory_space<vmem>>, vector<128x128xbf16>
    %4 = arith.extf %3 : vector<128x128xbf16> to vector<128x128xf32>
    %c0_2 = arith.constant 0 : index
    %c0_3 = arith.constant 0 : index
    %5 = vector.load %arg4[%c0_2, %c0_3] : memref<1x128xf32, #tpu.memory_space<vmem>>, vector<1x128xf32>
    %6 = vector.broadcast %5 : vector<1x128xf32> to vector<128x128xf32>
    %7 = arith.mulf %4, %6 : vector<128x128xf32>
    %c0_4 = arith.constant 0 : index
    %c0_5 = arith.constant 0 : index
    %8 = vector.load %arg5[%c0_4, %c0_5] : memref<1x128xf32, #tpu.memory_space<vmem>>, vector<1x128xf32>
    %9 = vector.broadcast %8 : vector<1x128xf32> to vector<128x128xf32>
    %10 = arith.addf %7, %9 : vector<128x128xf32>
    %cst = arith.constant 0.000000e+00 : f32
    %11 = vector.broadcast %cst : f32 to vector<128x128xf32>
    %12 = arith.maximumf %10, %11 : vector<128x128xf32>
    %13 = arith.truncf %12 : vector<128x128xf32> to vector<128x128xbf16>
    %c0_6 = arith.constant 0 : index
    %c0_7 = arith.constant 0 : index
    %14 = vector.load %arg8[%c0_6, %c0_7] : memref<128x128xf32, #tpu.memory_space<vmem>>, vector<128x128xf32>
    %c0_8 = arith.constant 0 : index
    %c0_9 = arith.constant 0 : index
    %15 = vector.load %arg6[%c0_8, %c0_9] : memref<128x128xbf16, #tpu.memory_space<vmem>>, vector<128x128xbf16>
    %cst_10 = arith.constant dense<0.000000e+00> : vector<128x128xf32>
    %16 = tpu.matmul %13, %15, %cst_10 {dimension_numbers = #tpu.dot_dimension_numbers<[1], [0], [0], [1], [0, 0, 1, 1], [], []>} : vector<128x128xbf16>, vector<128x128xbf16>, vector<128x128xf32> -> vector<128x128xf32>
    %17 = arith.addf %14, %16 : vector<128x128xf32>
    %c0_11 = arith.constant 0 : index
    %c0_12 = arith.constant 0 : index
    %18 = vector.load %arg8[%c0_11, %c0_12] : memref<128x128xf32, #tpu.memory_space<vmem>>, vector<128x128xf32>
    tpu.vector_store %arg8[%c0_11, %c0_12], %17 {strides = array<i32>} : memref<128x128xf32, #tpu.memory_space<vmem>>, vector<128x128xf32>,
    %c0_i32_13 = arith.constant 0 : i32
    %19 = arith.cmpi eq, %arg2, %c0_i32_13 : i32
    %20 = arith.extui %19 : i1 to i32
    %c0_i32_14 = arith.constant 0 : i32
    %21 = arith.cmpi ne, %20, %c0_i32_14 : i32
    scf.if %21 {
      %c0_15 = arith.constant 0 : index
      %c0_16 = arith.constant 0 : index
      %22 = vector.load %arg8[%c0_15, %c0_16] : memref<128x128xf32, #tpu.memory_space<vmem>>, vector<128x128xf32>
      %c0_17 = arith.constant 0 : index
      %c0_18 = arith.constant 0 : index
      %23 = vector.load %arg7[%c0_17, %c0_18] : memref<128x128xf32, #tpu.memory_space<vmem>>, vector<128x128xf32>
      tpu.vector_store %arg7[%c0_17, %c0_18], %22 {strides = array<i32>} : memref<128x128xf32, #tpu.memory_space<vmem>>, vector<128x128xf32>,
    } else {
    }
    return
  }
  func.func @transform_0(%arg0: i32, %arg1: i32, %arg2: i32) -> (i32, i32) {
    %c0_i32 = arith.constant 0 : i32
    return %arg0, %arg2 : i32, i32
  }
  func.func @transform_1(%arg0: i32, %arg1: i32, %arg2: i32) -> (i32, i32) {
    %c0_i32 = arith.constant 0 : i32
    %c0_i32_0 = arith.constant 0 : i32
    return %c0_i32, %arg2 : i32, i32
  }
  func.func @transform_2(%arg0: i32, %arg1: i32, %arg2: i32) -> (i32, i32) {
    %c0_i32 = arith.constant 0 : i32
    %c0_i32_0 = arith.constant 0 : i32
    return %c0_i32, %arg2 : i32, i32
  }
  func.func @transform_3(%arg0: i32, %arg1: i32, %arg2: i32) -> (i32, i32) {
    %c0_i32 = arith.constant 0 : i32
    return %arg2, %arg1 : i32, i32
  }
  func.func @transform_4(%arg0: i32, %arg1: i32, %arg2: i32) -> (i32, i32) {
    %c0_i32 = arith.constant 0 : i32
    return %arg0, %arg1 : i32, i32
  }
}

</mosaic_0001>

<bundles_post_ra>
// kernel: basic_block_w_forward.2
= control target key start
LH: loop header
LB: loop body
LE: loop exit
PB: predicated region body
PF: predicated region fallthrough
CT: control target
= control target key end

     0   :  { %s895_s3 = inlined_call_operand.vmem [shape: bf16[128,128], index: 3, kind: input, shape index: {}]   ;;  %s896_s0 = inlined_call_operand.vmem [shape: bf16[128,128], index: 0, kind: input, shape index: {}]   ;;  %s897_s1 = inlined_call_operand.vmem [shape: f32[1,128], index: 1, kind: input, shape index: {}]   ;;  %s898_s2 = inlined_call_operand.vmem [shape: f32[1,128], index: 2, kind: input, shape index: {}]   ;;  %s899_s4 = inlined_call_operand.vmem [shape: f32[1,128], index: 4, kind: input, shape index: {}]   ;;  %s900_s5 = inlined_call_operand.vmem [shape: f32[1,128], index: 5, kind: input, shape index: {}]   ;;  %s901_s6 = inlined_call_operand.vmem [shape: bf16[128,128], index: 6, kind: output, shape index: {}]  }
   0x1   :  { %v714_v0 = vld [vmem:[%s895_s3 + $0x38] sm:$0xff]   ;;  %v715_v1 = vld [vmem:[%s895_s3 + $0x30] sm:$0xff]   ;;  %v716_v2 = vld [vmem:[%s895_s3 + $0x28] sm:$0xff]  }
   0x2   :  { %666 = vmatprep.subr.bf16.mxu0 %v714_v0  ;;  %698 = vmatprep.subr.bf16.mxu1 %v714_v0  ;;  %v717_v3 = vld [vmem:[%s895_s3 + $0x20] sm:$0xff]   ;;  %v636_v9 = vld [vmem:[%s896_s0 + $0x8] sm:$0xff]   ;;  %v637_v16 = vld [vmem:[%s896_s0 + $0x10] sm:$0xff]  }
   0x3   :  { %667 = vmatpush3.bf16.msra.mxu0 %v714_v0  ;;  %706 = vmatpush3.bf16.msra.mxu1 %v714_v0  ;;  %v565_v4 = vld [vmem:[%s896_s0] sm:$0xff]   ;;  %v640_v13 = vld [vmem:[%s896_s0 + $0x28] sm:$0xff]   ;;  %v718_v17 = vld [vmem:[%s895_s3 + $0x18] sm:$0xff]   ;;  %v570_v20 = vunpack.c.l.bf16 %v636_v9  ;;  %v571_v21 = vunpack.c.h.bf16 %v636_v9  ;;  %v574_v28 = vunpack.c.l.bf16 %v637_v16  ;;  %v575_v40 = vunpack.c.h.bf16 %v637_v16 }
   0x4   :  { %668 = vmatprep.subr.bf16.mxu0 %v715_v1  ;;  %699 = vmatprep.subr.bf16.mxu1 %v715_v1  ;;  %v775_v5 = vld [vmem:[%s897_s1] ss:$0 sm:$0xff]  ;;  %v566_v6 = vunpack.c.l.bf16 %v565_v4  ;;  %v567_v7 = vunpack.c.h.bf16 %v565_v4  ;;  %v586_v24 = vunpack.c.l.bf16 %v640_v13  ;;  %v587_v25 = vunpack.c.h.bf16 %v640_v13  ;;  %v641_v31 = vld [vmem:[%s896_s0 + $0x30] sm:$0xff]   ;;  %v638_v44 = vld [vmem:[%s896_s0 + $0x18] sm:$0xff]  }
   0x5   :  { %v639_v8 = vld [vmem:[%s896_s0 + $0x20] sm:$0xff]   ;;  %v719_v32 = vld [vmem:[%s895_s3 + $0x10] sm:$0xff]   ;;  %v85_v35 = vmul.f32 %v570_v20, %v775_v5  ;;  %v86_v36 = vmul.f32 %v571_v21, %v775_v5  ;;  %v87_v42 = vmul.f32 %v574_v28, %v775_v5  ;;  %v590_v43 = vunpack.c.l.bf16 %v641_v31  ;;  %v642_v47 = vld [vmem:[%s896_s0 + $0x38] sm:$0xff]  }
   0x6   :  { %v786_v10 = vld [vmem:[%s898_s2] ss:$0 sm:$0xff]  ;;  %v582_v11 = vunpack.c.l.bf16 %v639_v8  ;;  %v583_v12 = vunpack.c.h.bf16 %v639_v8  ;;  %v83_v14 = vmul.f32 %v566_v6, %v775_v5  ;;  %v84_v15 = vmul.f32 %v567_v7, %v775_v5  ;;  %v720_v48 = vld [vmem:[%s895_s3 + $0x8] sm:$0xff]  }
   0x7   :  { %669 = vmatpush3.bf16.msra.mxu0 %v715_v1  ;;  %707 = vmatpush3.bf16.msra.mxu1 %v715_v1  ;;  %v93_v38 = vmul.f32 %v586_v24, %v775_v5  ;;  %v94_v39 = vmul.f32 %v587_v25, %v775_v5  ;;  %v88_v45 = vmul.f32 %v575_v40, %v775_v5  ;;  %v591_v46 = vunpack.c.h.bf16 %v641_v31  ;;  %v721_v63 = vld [vmem:[%s895_s3] sm:$0xff]  }
   0x8   :  { %670 = vmatprep.subr.bf16.mxu0 %v716_v2  ;;  %700 = vmatprep.subr.bf16.mxu1 %v716_v2  ;;  %v91_v18 = vmul.f32 %v582_v11, %v775_v5  ;;  %v92_v19 = vmul.f32 %v583_v12, %v775_v5  ;;  %v106_v22 = vadd.f32 %v786_v10, %v83_v14  ;;  %v578_v55 = vunpack.c.l.bf16 %v638_v44  ;;  %v531_v31 = vld [vmem:[%s900_s5] ss:$0 sm:$0xff] }
   0x9   :  { %v107_v23 = vadd.f32 %v786_v10, %v84_v15  ;;  %v108_v49 = vadd.f32 %v786_v10, %v85_v35  ;;  %v109_v50 = vadd.f32 %v786_v10, %v86_v36  ;;  %v95_v51 = vmul.f32 %v590_v43, %v775_v5 }
   0xa   :  { %v114_v26 = vadd.f32 %v786_v10, %v91_v18  ;;  %v115_v27 = vadd.f32 %v786_v10, %v92_v19  ;;  %v122_v29 = vmax.f32 %v106_v22, 0.0  ;;  %v116_v52 = vadd.f32 %v786_v10, %v93_v38 }
   0xb   :  { %671 = vmatpush3.bf16.msra.mxu0 %v716_v2  ;;  %708 = vmatpush3.bf16.msra.mxu1 %v716_v2  ;;  %v123_v30 = vmax.f32 %v107_v23, 0.0  ;;  %v117_v53 = vadd.f32 %v786_v10, %v94_v39  ;;  %v96_v54 = vmul.f32 %v591_v46, %v775_v5  ;;  %v110_v56 = vadd.f32 %v786_v10, %v87_v42 }
   0xc   :  { %672 = vmatprep.subr.bf16.mxu0 %v717_v3  ;;  %701 = vmatprep.subr.bf16.mxu1 %v717_v3  ;;  %v130_v33 = vmax.f32 %v114_v26, 0.0  ;;  %v131_v34 = vmax.f32 %v115_v27, 0.0  ;;  %v579_v57 = vunpack.c.h.bf16 %v638_v44  ;;  %v594_v58 = vunpack.c.l.bf16 %v642_v47 }
   0xd   :  { %v138_v37 = vpack.c.bf16 %v123_v30, %v122_v29  ;;  %v595_v59 = vunpack.c.h.bf16 %v642_v47  ;;  %v111_v60 = vadd.f32 %v786_v10, %v88_v45  ;;  %v118_v61 = vadd.f32 %v786_v10, %v95_v51 }
   0xe   :  { %v142_v41 = vpack.c.bf16 %v131_v34, %v130_v33  ;;  %v119_v62 = vadd.f32 %v786_v10, %v96_v54  ;;  %v124_v0 = vmax.f32 %v108_v49, 0.0  ;;  %v125_v1 = vmax.f32 %v109_v50, 0.0 }
   0xf   :  { %673 = vmatpush3.bf16.msra.mxu0 %v717_v3  ;;  %709 = vmatpush3.bf16.msra.mxu1 %v717_v3  ;;  %v132_v2 = vmax.f32 %v116_v52, 0.0  ;;  %v133_v3 = vmax.f32 %v117_v53, 0.0  ;;  %v89_v4 = vmul.f32 %v578_v55, %v775_v5  ;;  %v90_v6 = vmul.f32 %v579_v57, %v775_v5 }
  0x10   :  { %674 = vmatprep.subr.bf16.mxu0 %v718_v17  ;;  %702 = vmatprep.subr.bf16.mxu1 %v718_v17  ;;  %v97_v7 = vmul.f32 %v594_v58, %v775_v5  ;;  %v98_v8 = vmul.f32 %v595_v59, %v775_v5  ;;  %v126_v9 = vmax.f32 %v110_v56, 0.0  ;;  %v127_v11 = vmax.f32 %v111_v60, 0.0 }
  0x11   :  { %682 = vmatprep.mubr.bf16.mxu0 %v138_v37  ;;  %690 = vmatprep.mubr.bf16.mxu1 %v142_v41  ;;  %v134_v12 = vmax.f32 %v118_v61, 0.0  ;;  %v135_v13 = vmax.f32 %v119_v62, 0.0  ;;  %v139_v14 = vpack.c.bf16 %v125_v1, %v124_v0  ;;  %v143_v15 = vpack.c.bf16 %v133_v3, %v132_v2 }
  0x12   :  { %v112_v16 = vadd.f32 %v786_v10, %v89_v4  ;;  %v120_v18 = vadd.f32 %v786_v10, %v97_v7  ;;  %v121_v19 = vadd.f32 %v786_v10, %v98_v8  ;;  %v140_v5 = vpack.c.bf16 %v127_v11, %v126_v9 }
  0x13   :  { %675 = vmatpush3.bf16.msra.mxu0 %v718_v17  ;;  %710 = vmatpush3.bf16.msra.mxu1 %v718_v17  ;;  %v113_v17 = vadd.f32 %v786_v10, %v90_v6  ;;  %v144_v20 = vpack.c.bf16 %v135_v13, %v134_v12  ;;  %v850_v10 = vld [vmem:[%s899_s4] ss:$0 sm:$0xff] }
  0x14   :  { %676 = vmatprep.subr.bf16.mxu0 %v719_v32  ;;  %703 = vmatprep.subr.bf16.mxu1 %v719_v32  ;;  %v128_v21 = vmax.f32 %v112_v16, 0.0  ;;  %v136_v23 = vmax.f32 %v120_v18, 0.0  ;;  %v137_v24 = vmax.f32 %v121_v19, 0.0 }
  0x15   :  { %v129_v22 = vmax.f32 %v113_v17, 0.0 }
  0x16   :  { %v145_v26 = vpack.c.bf16 %v137_v24, %v136_v23 }
  0x17   :  { %677 = vmatpush3.bf16.msra.mxu0 %v719_v32  ;;  %711 = vmatpush3.bf16.msra.mxu1 %v719_v32  ;;  %v141_v25 = vpack.c.bf16 %v129_v22, %v128_v21 }
  0x18   :  { %678 = vmatprep.subr.bf16.mxu0 %v720_v48  ;;  %704 = vmatprep.subr.bf16.mxu1 %v720_v48 }
  0x1b   :  { %679 = vmatpush3.bf16.msra.mxu0 %v720_v48  ;;  %712 = vmatpush3.bf16.msra.mxu1 %v720_v48 }
  0x1c   :  { %680 = vmatprep.subr.bf16.mxu0 %v721_v63  ;;  %705 = vmatprep.subr.bf16.mxu1 %v721_v63 }
  0x1f   :  { %681 = vmatpush3.bf16.msra.mxu0 %v721_v63  ;;  %713 = vmatpush3.bf16.msra.mxu1 %v721_v63 }
  0x22   :  { %683 = vmatmul.mubr.bf16.vlgmr.msra.gmra.mxu0 %v139_v14  ;;  %691 = vmatmul.mubr.bf16.vlgmr.msra.gmra.mxu1 %v143_v15 }
  0x23   :  { %686 = vmatprep.mubr.bf16.mxu0 %v140_v5  ;;  %694 = vmatprep.mubr.bf16.mxu1 %v144_v20 }
  0x2a   :  { %687 = vmatmul.mubr.bf16.gmra.mxu0 %v141_v25  ;;  %695 = vmatmul.mubr.bf16.gmra.mxu1 %v145_v26 }
  0xe2   :  { %v684_v27 = vpop.f32.mrf.mxu0  ;;  %v692_v28 = vpop.f32.mrf.mxu1 }
  0xe3   :  { %v383_v29 = vmul.f32 %v684_v27, %v850_v10  ;;  %v391_v30 = vmul.f32 %v692_v28, %v850_v10 }
  0xe4   :  { %v260_v32 = vpop.f32.mrf.mxu0  ;;  %v292_v33 = vpop.f32.mrf.mxu1 }
  0xe5   :  { %v381_v34 = vmul.f32 %v850_v10, %v260_v32  ;;  %v389_v35 = vmul.f32 %v850_v10, %v292_v33  ;;  %v406_v38 = vadd.f32 %v531_v31, %v383_v29  ;;  %v414_v39 = vadd.f32 %v531_v31, %v391_v30 }
  0xe6   :  { %v685_v36 = vpop.f32.mrf.mxu0  ;;  %v693_v37 = vpop.f32.mrf.mxu1 }
  0xe7   :  { %v384_v40 = vmul.f32 %v685_v36, %v850_v10  ;;  %v392_v41 = vmul.f32 %v693_v37, %v850_v10  ;;  %v404_v44 = vadd.f32 %v531_v31, %v381_v34  ;;  %v412_v45 = vadd.f32 %v531_v31, %v389_v35 }
  0xe8   :  { %v263_v42 = vpop.f32.mrf.mxu0  ;;  %v295_v43 = vpop.f32.mrf.mxu1  ;;  %v422_v52 = vmax.f32 %v406_v38, 0.0  ;;  %v430_v53 = vmax.f32 %v414_v39, 0.0 }
  0xe9   :  { %v382_v46 = vmul.f32 %v850_v10, %v263_v42  ;;  %v390_v47 = vmul.f32 %v850_v10, %v295_v43  ;;  %v407_v48 = vadd.f32 %v531_v31, %v384_v40  ;;  %v415_v49 = vadd.f32 %v531_v31, %v392_v41 }
  0xea   :  { %v688_v50 = vpop.f32.mrf.mxu0  ;;  %v696_v51 = vpop.f32.mrf.mxu1  ;;  %v420_v62 = vmax.f32 %v404_v44, 0.0  ;;  %v428_v63 = vmax.f32 %v412_v45, 0.0 }
  0xeb   :  { %v405_v54 = vadd.f32 %v531_v31, %v382_v46  ;;  %v413_v55 = vadd.f32 %v531_v31, %v390_v47  ;;  %v423_v56 = vmax.f32 %v407_v48, 0.0  ;;  %v431_v57 = vmax.f32 %v415_v49, 0.0 }
  0xec   :  { %v387_v58 = vmul.f32 %v688_v50, %v850_v10  ;;  %v395_v59 = vmul.f32 %v696_v51, %v850_v10  ;;  %v276_v60 = vpop.f32.mrf.mxu0  ;;  %v308_v61 = vpop.f32.mrf.mxu1 }
  0xed   :  { %v421_v0 = vmax.f32 %v405_v54, 0.0  ;;  %v429_v1 = vmax.f32 %v413_v55, 0.0  ;;  %v604_v2 = vpack.c.bf16 %v423_v56, %v422_v52  ;;  %v624_v3 = vpack.c.bf16 %v431_v57, %v430_v53 }
  0xee   :  { %v385_v4 = vmul.f32 %v850_v10, %v276_v60  ;;  %v393_v6 = vmul.f32 %v850_v10, %v308_v61  ;;  %v689_v7 = vpop.f32.mrf.mxu0  ;;  %v697_v8 = vpop.f32.mrf.mxu1  ;;  %v410_v12 = vadd.f32 %v531_v31, %v387_v58  ;;  %v418_v13 = vadd.f32 %v531_v31, %v395_v59 }
  0xef   :  { %v599_v9 = vpack.c.bf16 %v421_v0, %v420_v62  ;;  %v619_v11 = vpack.c.bf16 %v429_v1, %v428_v63  ;;  %643 = vst [vmem:[%s901_s6 + $0x8] sm:$0xff] %v604_v2   ;;  %647 = vst [vmem:[%s901_s6 + $0x28] sm:$0xff] %v624_v3   ;;  %v388_v14 = vmul.f32 %v689_v7, %v850_v10 }
  0xf0   :  { %v396_v15 = vmul.f32 %v697_v8, %v850_v10  ;;  %v279_v16 = vpop.f32.mrf.mxu0  ;;  %v311_v17 = vpop.f32.mrf.mxu1  ;;  %v408_v18 = vadd.f32 %v531_v31, %v385_v4  ;;  %v416_v19 = vadd.f32 %v531_v31, %v393_v6  ;;  %v426_v25 = vmax.f32 %v410_v12, 0.0 }
  0xf1   :  { %600 = vst [vmem:[%s901_s6] sm:$0xff] %v599_v9   ;;  %646 = vst [vmem:[%s901_s6 + $0x20] sm:$0xff] %v619_v11   ;;  %v386_v5 = vmul.f32 %v850_v10, %v279_v16  ;;  %v394_v20 = vmul.f32 %v850_v10, %v311_v17  ;;  %v411_v21 = vadd.f32 %v531_v31, %v388_v14  ;;  %v434_v26 = vmax.f32 %v418_v13, 0.0 }
  0xf2   :  { %v419_v22 = vadd.f32 %v531_v31, %v396_v15  ;;  %v424_v29 = vmax.f32 %v408_v18, 0.0  ;;  %v432_v30 = vmax.f32 %v416_v19, 0.0 }
  0xf3   :  { %v409_v23 = vadd.f32 %v531_v31, %v386_v5  ;;  %v417_v24 = vadd.f32 %v531_v31, %v394_v20  ;;  %v427_v27 = vmax.f32 %v411_v21, 0.0 }
  0xf4   :  { %v435_v28 = vmax.f32 %v419_v22, 0.0 }
  0xf5   :  { %v425_v32 = vmax.f32 %v409_v23, 0.0  ;;  %v433_v33 = vmax.f32 %v417_v24, 0.0  ;;  %v614_v34 = vpack.c.bf16 %v427_v27, %v426_v25 }
  0xf6   :  { %v634_v35 = vpack.c.bf16 %v435_v28, %v434_v26 }
  0xf7   :  { %v609_v36 = vpack.c.bf16 %v425_v32, %v424_v29  ;;  %v629_v37 = vpack.c.bf16 %v433_v33, %v432_v30  ;;  %645 = vst [vmem:[%s901_s6 + $0x18] sm:$0xff] %v614_v34  }
  0xf8   :  { %649 = vst [vmem:[%s901_s6 + $0x38] sm:$0xff] %v634_v35  }
  0xf9   :  { %644 = vst [vmem:[%s901_s6 + $0x10] sm:$0xff] %v609_v36   ;;  %648 = vst [vmem:[%s901_s6 + $0x30] sm:$0xff] %v629_v37  }

// kernel: basic_block_w_forward.3
= control target key start
LH: loop header
LB: loop body
LE: loop exit
PB: predicated region body
PF: predicated region fallthrough
CT: control target
= control target key end

     0   :  { %s672_s3 = inlined_call_operand.vmem [shape: bf16[128,128], index: 3, kind: input, shape index: {}]   ;;  %s673_s0 = inlined_call_operand.vmem [shape: bf16[128,128], index: 0, kind: input, shape index: {}]   ;;  %s674_s1 = inlined_call_operand.vmem [shape: f32[1,128], index: 1, kind: input, shape index: {}]   ;;  %s675_s2 = inlined_call_operand.vmem [shape: f32[1,128], index: 2, kind: input, shape index: {}]   ;;  %s676_s4 = inlined_call_operand.vmem [shape: f32[128,128], index: 4, kind: output, shape index: {}]  }
   0x1   :  { %v501_v0 = vld [vmem:[%s672_s3 + $0x38] sm:$0xff]   ;;  %v502_v1 = vld [vmem:[%s672_s3 + $0x30] sm:$0xff]   ;;  %v503_v2 = vld [vmem:[%s672_s3 + $0x28] sm:$0xff]  }
   0x2   :  { %453 = vmatprep.subr.bf16.mxu0 %v501_v0  ;;  %485 = vmatprep.subr.bf16.mxu1 %v501_v0  ;;  %v504_v3 = vld [vmem:[%s672_s3 + $0x20] sm:$0xff]   ;;  %v430_v9 = vld [vmem:[%s673_s0 + $0x8] sm:$0xff]   ;;  %v431_v16 = vld [vmem:[%s673_s0 + $0x10] sm:$0xff]  }
   0x3   :  { %454 = vmatpush3.bf16.msra.mxu0 %v501_v0  ;;  %493 = vmatpush3.bf16.msra.mxu1 %v501_v0  ;;  %v399_v4 = vld [vmem:[%s673_s0] sm:$0xff]   ;;  %v434_v13 = vld [vmem:[%s673_s0 + $0x28] sm:$0xff]   ;;  %v505_v17 = vld [vmem:[%s672_s3 + $0x18] sm:$0xff]   ;;  %v404_v20 = vunpack.c.l.bf16 %v430_v9  ;;  %v405_v21 = vunpack.c.h.bf16 %v430_v9  ;;  %v408_v28 = vunpack.c.l.bf16 %v431_v16  ;;  %v409_v40 = vunpack.c.h.bf16 %v431_v16 }
   0x4   :  { %455 = vmatprep.subr.bf16.mxu0 %v502_v1  ;;  %486 = vmatprep.subr.bf16.mxu1 %v502_v1  ;;  %v552_v5 = vld [vmem:[%s674_s1] ss:$0 sm:$0xff]  ;;  %v400_v6 = vunpack.c.l.bf16 %v399_v4  ;;  %v401_v7 = vunpack.c.h.bf16 %v399_v4  ;;  %v420_v24 = vunpack.c.l.bf16 %v434_v13  ;;  %v421_v25 = vunpack.c.h.bf16 %v434_v13  ;;  %v435_v31 = vld [vmem:[%s673_s0 + $0x30] sm:$0xff]   ;;  %v432_v44 = vld [vmem:[%s673_s0 + $0x18] sm:$0xff]  }
   0x5   :  { %v433_v8 = vld [vmem:[%s673_s0 + $0x20] sm:$0xff]   ;;  %v506_v32 = vld [vmem:[%s672_s3 + $0x10] sm:$0xff]   ;;  %v79_v35 = vmul.f32 %v404_v20, %v552_v5  ;;  %v80_v36 = vmul.f32 %v405_v21, %v552_v5  ;;  %v81_v42 = vmul.f32 %v408_v28, %v552_v5  ;;  %v424_v43 = vunpack.c.l.bf16 %v435_v31  ;;  %v436_v47 = vld [vmem:[%s673_s0 + $0x38] sm:$0xff]  }
   0x6   :  { %v563_v10 = vld [vmem:[%s675_s2] ss:$0 sm:$0xff]  ;;  %v416_v11 = vunpack.c.l.bf16 %v433_v8  ;;  %v417_v12 = vunpack.c.h.bf16 %v433_v8  ;;  %v77_v14 = vmul.f32 %v400_v6, %v552_v5  ;;  %v78_v15 = vmul.f32 %v401_v7, %v552_v5  ;;  %v507_v48 = vld [vmem:[%s672_s3 + $0x8] sm:$0xff]  }
   0x7   :  { %456 = vmatpush3.bf16.msra.mxu0 %v502_v1  ;;  %494 = vmatpush3.bf16.msra.mxu1 %v502_v1  ;;  %v87_v38 = vmul.f32 %v420_v24, %v552_v5  ;;  %v88_v39 = vmul.f32 %v421_v25, %v552_v5  ;;  %v82_v45 = vmul.f32 %v409_v40, %v552_v5  ;;  %v425_v46 = vunpack.c.h.bf16 %v435_v31  ;;  %v508_v63 = vld [vmem:[%s672_s3] sm:$0xff]  }
   0x8   :  { %457 = vmatprep.subr.bf16.mxu0 %v503_v2  ;;  %487 = vmatprep.subr.bf16.mxu1 %v503_v2  ;;  %v85_v18 = vmul.f32 %v416_v11, %v552_v5  ;;  %v86_v19 = vmul.f32 %v417_v12, %v552_v5  ;;  %v100_v22 = vadd.f32 %v563_v10, %v77_v14  ;;  %v412_v55 = vunpack.c.l.bf16 %v432_v44 }
   0x9   :  { %v101_v23 = vadd.f32 %v563_v10, %v78_v15  ;;  %v102_v49 = vadd.f32 %v563_v10, %v79_v35  ;;  %v103_v50 = vadd.f32 %v563_v10, %v80_v36  ;;  %v89_v51 = vmul.f32 %v424_v43, %v552_v5 }
   0xa   :  { %v108_v26 = vadd.f32 %v563_v10, %v85_v18  ;;  %v109_v27 = vadd.f32 %v563_v10, %v86_v19  ;;  %v116_v29 = vmax.f32 %v100_v22, 0.0  ;;  %v110_v52 = vadd.f32 %v563_v10, %v87_v38 }
   0xb   :  { %458 = vmatpush3.bf16.msra.mxu0 %v503_v2  ;;  %495 = vmatpush3.bf16.msra.mxu1 %v503_v2  ;;  %v117_v30 = vmax.f32 %v101_v23, 0.0  ;;  %v111_v53 = vadd.f32 %v563_v10, %v88_v39  ;;  %v90_v54 = vmul.f32 %v425_v46, %v552_v5  ;;  %v104_v56 = vadd.f32 %v563_v10, %v81_v42 }
   0xc   :  { %459 = vmatprep.subr.bf16.mxu0 %v504_v3  ;;  %488 = vmatprep.subr.bf16.mxu1 %v504_v3  ;;  %v124_v33 = vmax.f32 %v108_v26, 0.0  ;;  %v125_v34 = vmax.f32 %v109_v27, 0.0  ;;  %v413_v57 = vunpack.c.h.bf16 %v432_v44  ;;  %v428_v58 = vunpack.c.l.bf16 %v436_v47 }
   0xd   :  { %v132_v37 = vpack.c.bf16 %v117_v30, %v116_v29  ;;  %v429_v59 = vunpack.c.h.bf16 %v436_v47  ;;  %v105_v60 = vadd.f32 %v563_v10, %v82_v45  ;;  %v112_v61 = vadd.f32 %v563_v10, %v89_v51 }
   0xe   :  { %v136_v41 = vpack.c.bf16 %v125_v34, %v124_v33  ;;  %v113_v62 = vadd.f32 %v563_v10, %v90_v54  ;;  %v118_v0 = vmax.f32 %v102_v49, 0.0  ;;  %v119_v1 = vmax.f32 %v103_v50, 0.0 }
   0xf   :  { %460 = vmatpush3.bf16.msra.mxu0 %v504_v3  ;;  %496 = vmatpush3.bf16.msra.mxu1 %v504_v3  ;;  %v126_v2 = vmax.f32 %v110_v52, 0.0  ;;  %v127_v3 = vmax.f32 %v111_v53, 0.0  ;;  %v83_v4 = vmul.f32 %v412_v55, %v552_v5  ;;  %v84_v6 = vmul.f32 %v413_v57, %v552_v5 }
  0x10   :  { %461 = vmatprep.subr.bf16.mxu0 %v505_v17  ;;  %489 = vmatprep.subr.bf16.mxu1 %v505_v17  ;;  %v91_v7 = vmul.f32 %v428_v58, %v552_v5  ;;  %v92_v8 = vmul.f32 %v429_v59, %v552_v5  ;;  %v120_v9 = vmax.f32 %v104_v56, 0.0  ;;  %v121_v11 = vmax.f32 %v105_v60, 0.0 }
  0x11   :  { %469 = vmatprep.mubr.bf16.mxu0 %v132_v37  ;;  %477 = vmatprep.mubr.bf16.mxu1 %v136_v41  ;;  %v128_v12 = vmax.f32 %v112_v61, 0.0  ;;  %v129_v13 = vmax.f32 %v113_v62, 0.0  ;;  %v133_v14 = vpack.c.bf16 %v119_v1, %v118_v0  ;;  %v137_v15 = vpack.c.bf16 %v127_v3, %v126_v2 }
  0x12   :  { %v106_v16 = vadd.f32 %v563_v10, %v83_v4  ;;  %v114_v18 = vadd.f32 %v563_v10, %v91_v7  ;;  %v115_v19 = vadd.f32 %v563_v10, %v92_v8  ;;  %v134_v5 = vpack.c.bf16 %v121_v11, %v120_v9 }
  0x13   :  { %462 = vmatpush3.bf16.msra.mxu0 %v505_v17  ;;  %497 = vmatpush3.bf16.msra.mxu1 %v505_v17  ;;  %v107_v17 = vadd.f32 %v563_v10, %v84_v6  ;;  %v138_v20 = vpack.c.bf16 %v129_v13, %v128_v12 }
  0x14   :  { %463 = vmatprep.subr.bf16.mxu0 %v506_v32  ;;  %490 = vmatprep.subr.bf16.mxu1 %v506_v32  ;;  %v122_v21 = vmax.f32 %v106_v16, 0.0  ;;  %v130_v23 = vmax.f32 %v114_v18, 0.0  ;;  %v131_v24 = vmax.f32 %v115_v19, 0.0 }
  0x15   :  { %v123_v22 = vmax.f32 %v107_v17, 0.0 }
  0x16   :  { %v139_v26 = vpack.c.bf16 %v131_v24, %v130_v23 }
  0x17   :  { %464 = vmatpush3.bf16.msra.mxu0 %v506_v32  ;;  %498 = vmatpush3.bf16.msra.mxu1 %v506_v32  ;;  %v135_v25 = vpack.c.bf16 %v123_v22, %v122_v21 }
  0x18   :  { %465 = vmatprep.subr.bf16.mxu0 %v507_v48  ;;  %491 = vmatprep.subr.bf16.mxu1 %v507_v48 }
  0x1b   :  { %466 = vmatpush3.bf16.msra.mxu0 %v507_v48  ;;  %499 = vmatpush3.bf16.msra.mxu1 %v507_v48 }
  0x1c   :  { %467 = vmatprep.subr.bf16.mxu0 %v508_v63  ;;  %492 = vmatprep.subr.bf16.mxu1 %v508_v63 }
  0x1f   :  { %468 = vmatpush3.bf16.msra.mxu0 %v508_v63  ;;  %500 = vmatpush3.bf16.msra.mxu1 %v508_v63 }
  0x22   :  { %470 = vmatmul.mubr.bf16.vlgmr.msra.gmra.mxu0 %v133_v14  ;;  %478 = vmatmul.mubr.bf16.vlgmr.msra.gmra.mxu1 %v137_v15 }
  0x23   :  { %473 = vmatprep.mubr.bf16.mxu0 %v134_v5  ;;  %481 = vmatprep.mubr.bf16.mxu1 %v138_v20 }
  0x2a   :  { %474 = vmatmul.mubr.bf16.gmra.mxu0 %v135_v25  ;;  %482 = vmatmul.mubr.bf16.gmra.mxu1 %v139_v26 }
  0xe2   :  { %v471_v27 = vpop.f32.mrf.mxu0  ;;  %v479_v28 = vpop.f32.mrf.mxu1 }
  0xe3   :  { %370 = vst [vmem:[%s676_s4 + $0x10] sm:$0xff] %v471_v27  ;;  %378 = vst [vmem:[%s676_s4 + $0x50] sm:$0xff] %v479_v28 }
  0xe4   :  { %v254_v10 = vpop.f32.mrf.mxu0  ;;  %v286_v29 = vpop.f32.mrf.mxu1 }
  0xe5   :  { %368 = vst [vmem:[%s676_s4] sm:$0xff] %v254_v10  ;;  %376 = vst [vmem:[%s676_s4 + $0x40] sm:$0xff] %v286_v29 }
  0xe6   :  { %v472_v30 = vpop.f32.mrf.mxu0  ;;  %v480_v31 = vpop.f32.mrf.mxu1 }
  0xe7   :  { %371 = vst [vmem:[%s676_s4 + $0x18] sm:$0xff] %v472_v30  ;;  %379 = vst [vmem:[%s676_s4 + $0x58] sm:$0xff] %v480_v31 }
  0xe8   :  { %v257_v32 = vpop.f32.mrf.mxu0  ;;  %v289_v33 = vpop.f32.mrf.mxu1 }
  0xe9   :  { %369 = vst [vmem:[%s676_s4 + $0x8] sm:$0xff] %v257_v32  ;;  %377 = vst [vmem:[%s676_s4 + $0x48] sm:$0xff] %v289_v33 }
  0xea   :  { %v475_v34 = vpop.f32.mrf.mxu0  ;;  %v483_v35 = vpop.f32.mrf.mxu1 }
  0xeb   :  { %374 = vst [vmem:[%s676_s4 + $0x30] sm:$0xff] %v475_v34  ;;  %382 = vst [vmem:[%s676_s4 + $0x70] sm:$0xff] %v483_v35 }
  0xec   :  { %v270_v36 = vpop.f32.mrf.mxu0  ;;  %v302_v37 = vpop.f32.mrf.mxu1 }
  0xed   :  { %372 = vst [vmem:[%s676_s4 + $0x20] sm:$0xff] %v270_v36  ;;  %380 = vst [vmem:[%s676_s4 + $0x60] sm:$0xff] %v302_v37 }
  0xee   :  { %v476_v38 = vpop.f32.mrf.mxu0  ;;  %v484_v39 = vpop.f32.mrf.mxu1 }
  0xef   :  { %375 = vst [vmem:[%s676_s4 + $0x38] sm:$0xff] %v476_v38  ;;  %383 = vst [vmem:[%s676_s4 + $0x78] sm:$0xff] %v484_v39 }
  0xf0   :  { %v273_v40 = vpop.f32.mrf.mxu0  ;;  %v305_v41 = vpop.f32.mrf.mxu1 }
  0xf1   :  { %373 = vst [vmem:[%s676_s4 + $0x28] sm:$0xff] %v273_v40  ;;  %381 = vst [vmem:[%s676_s4 + $0x68] sm:$0xff] %v305_v41 }

</bundles_post_ra>
